<compile_context>
chip_gen: v6e
topology: v6e:2x2x1
jax: 0.10.0
libtpu: 0.0.40
codegen_flags: <defaults>
</compile_context>

<pallas_src>
import functools

import jax
import jax.numpy as jnp
from jax import lax
from jax.experimental import pallas as pl
from jax.experimental.pallas import tpu as pltpu


def _attention_head_kernel(x_ref, w_ref, o_ref, *, batch, seq):
    # x_ref: (B*T, C) f32   -- flattened in the wrapper (free metadata reshape)
    # w_ref: (3, C, H) f32  -- [Wq * C**-0.5, Wk, Wv], stacked once at init
    # o_ref: (B*T, H) f32
    B, T = batch, seq
    H = o_ref.shape[-1]

    x = x_ref[...]                                            # (B*T, C)

    # ---- QKV projections: three dots off leading-axis weight views ----
    q = jnp.dot(x, w_ref[0], preferred_element_type=jnp.float32)  # (B*T, H), pre-scaled
    k = jnp.dot(x, w_ref[1], preferred_element_type=jnp.float32)
    v = jnp.dot(x, w_ref[2], preferred_element_type=jnp.float32)

    # sublane-tile-aligned split of the leading axis (T == 8): layout no-op
    q = q.reshape(B, T, H)
    k = k.reshape(B, T, H)
    v = v.reshape(B, T, H)

    # ---- scores: contract head dim directly (no explicit k transpose) ----
    wei = lax.dot_general(
        q, k,
        dimension_numbers=(((2,), (2,)), ((0,), (0,))),
        preferred_element_type=jnp.float32,
    )                                                         # (B, T, T)

    # ---- causal mask (tril) ----
    row = lax.broadcasted_iota(jnp.int32, (T, T), 0)
    col = lax.broadcasted_iota(jnp.int32, (T, T), 1)
    wei = jnp.where((col <= row)[None, :, :], wei, -jnp.inf)

    # ---- numerically stable softmax along the key axis ----
    m = jnp.max(wei, axis=-1, keepdims=True)
    e = jnp.exp(wei - m)
    denom = jnp.sum(e, axis=-1, keepdims=True)
    r = pl.reciprocal(denom, approx=True)                     # EUP vrcp
    r = r * (2.0 - denom * r)                                 # one Newton step -> f32 accuracy
    p = e * r

    # TODO(synk): nn.Dropout on attention weights is identity in eval mode;
    # training-mode stochastic dropout is not applied here.

    # ---- weighted sum of values (batched) ----
    out = lax.dot_general(
        p, v,
        dimension_numbers=(((2,), (1,)), ((0,), (0,))),
        preferred_element_type=jnp.float32,
    )                                                         # (B, T, H)

    # tile-aligned merge back to 2-D for the store (wrapper reshapes to (B,T,H))
    o_ref[...] = out.reshape(B * T, H).astype(o_ref.dtype)


def make_attention_head_params(wq, wk, wv, n_embed):
    """One-time (init-time) parameter prep: stack [Wq * C**-0.5, Wk, Wv].

    Folding the constant score scale into Wq here removes the per-call
    concat/scale from the hot path (done once, not per forward call).
    NOTE: the PyTorch reference scales by n_embed (C), not head_size.
    """
    scale = jnp.float32(n_embed) ** -0.5
    return jnp.stack([wq * scale, wk, wv], axis=0)            # (3, C, H)


def attention_head(x, w_qkv):
    """x: (B, T, C) f32; w_qkv: (3, C, H) from make_attention_head_params."""
    B, T, C = x.shape
    H = w_qkv.shape[-1]
    x2d = x.reshape(B * T, C)       # free metadata reshape outside the kernel

    itemsize = jnp.dtype(x.dtype).itemsize
    cost = pl.CostEstimate(
        flops=2 * B * T * C * 3 * H + 2 * 2 * B * T * T * H,
        transcendentals=B * T * T + B * T,                    # exp + reciprocal
        bytes_accessed=(x2d.size + int(w_qkv.size) + B * T * H) * itemsize,
    )

    out2d = pl.pallas_call(
        functools.partial(_attention_head_kernel, batch=B, seq=T),
        out_shape=jax.ShapeDtypeStruct((B * T, H), x.dtype),
        in_specs=[
            pl.BlockSpec(memory_space=pltpu.MemorySpace.VMEM),
            pl.BlockSpec(memory_space=pltpu.MemorySpace.VMEM),
        ],
        out_specs=pl.BlockSpec(memory_space=pltpu.MemorySpace.VMEM),
        cost_estimate=cost,
    )(x2d, w_qkv)
    return out2d.reshape(B, T, H)


def _reference(x, wk, wq, wv):
    B, T, C = x.shape
    k = x @ wk
    q = x @ wq
    v = x @ wv
    wei = (q @ jnp.swapaxes(k, -2, -1)) * (C ** -0.5)
    mask = jnp.tril(jnp.ones((T, T), dtype=bool))
    wei = jnp.where(mask[None, :, :], wei, -jnp.inf)
    wei = jax.nn.softmax(wei, axis=-1)
    return wei @ v


if __name__ == "__main__":
    # shapes implied by the module: B=2, T=block_size=8, C=n_embed=32, head_size=16
    B, T, C, HEAD = 2, 8, 32, 16
    key = jax.random.PRNGKey(0)
    kx, kk, kq, kv = jax.random.split(key, 4)

    x = jax.random.normal(kx, (B, T, C), dtype=jnp.float32)
    # deterministic stand-in for nn.Linear weights, stored as (C, H)
    wk = jax.random.normal(kk, (C, HEAD), dtype=jnp.float32) * (C ** -0.5)
    wq = jax.random.normal(kq, (C, HEAD), dtype=jnp.float32) * (C ** -0.5)
    wv = jax.random.normal(kv, (C, HEAD), dtype=jnp.float32) * (C ** -0.5)

    # init-time (one-shot) parameter fusion: stacked [Wq*scale, Wk, Wv]
    w_qkv = make_attention_head_params(wq, wk, wv, C)

    out = attention_head(x, w_qkv)
    out = jax.block_until_ready(out)

    ref = _reference(x, wk, wq, wv)
    assert out.shape == (B, T, HEAD)
    assert jnp.allclose(out, ref, atol=1e-5, rtol=1e-5), "mismatch vs reference"

    print("KERNEL_OK")
</pallas_src>

<mosaic_0001>
module attributes {stable_mosaic.version = 11 : i64} {
  func.func @_attention_head_kernel(%arg0: memref<16x32xf32, #tpu.memory_space<vmem>>, %arg1: memref<3x32x16xf32, #tpu.memory_space<vmem>>, %arg2: memref<16x16xf32, #tpu.memory_space<vmem>>) attributes {dimension_semantics = [], scalar_prefetch = 0 : i64, scratch_operands = 0 : i64, tpu.core_type = #tpu.core_type<tc>} {
    %c0 = arith.constant 0 : index
    %c0_0 = arith.constant 0 : index
    %0 = vector.load %arg0[%c0, %c0_0] : memref<16x32xf32, #tpu.memory_space<vmem>>, vector<16x32xf32>
    %c0_1 = arith.constant 0 : index
    %c0_2 = arith.constant 0 : index
    %c0_3 = arith.constant 0 : index
    %1 = vector.load %arg1[%c0_1, %c0_2, %c0_3] : memref<3x32x16xf32, #tpu.memory_space<vmem>>, vector<1x32x16xf32>
    %2 = vector.shape_cast %1 : vector<1x32x16xf32> to vector<32x16xf32>
    %cst = arith.constant dense<0.000000e+00> : vector<16x16xf32>
    %3 = tpu.matmul %0, %2, %cst {dimension_numbers = #tpu.dot_dimension_numbers<[1], [0], [0], [1], [0, 0, 1, 1], [], []>} : vector<16x32xf32>, vector<32x16xf32>, vector<16x16xf32> -> vector<16x16xf32>
    %c1 = arith.constant 1 : index
    %c0_4 = arith.constant 0 : index
    %c0_5 = arith.constant 0 : index
    %4 = vector.load %arg1[%c1, %c0_4, %c0_5] : memref<3x32x16xf32, #tpu.memory_space<vmem>>, vector<1x32x16xf32>
    %5 = vector.shape_cast %4 : vector<1x32x16xf32> to vector<32x16xf32>
    %cst_6 = arith.constant dense<0.000000e+00> : vector<16x16xf32>
    %6 = tpu.matmul %0, %5, %cst_6 {dimension_numbers = #tpu.dot_dimension_numbers<[1], [0], [0], [1], [0, 0, 1, 1], [], []>} : vector<16x32xf32>, vector<32x16xf32>, vector<16x16xf32> -> vector<16x16xf32>
    %c2 = arith.constant 2 : index
    %c0_7 = arith.constant 0 : index
    %c0_8 = arith.constant 0 : index
    %7 = vector.load %arg1[%c2, %c0_7, %c0_8] : memref<3x32x16xf32, #tpu.memory_space<vmem>>, vector<1x32x16xf32>
    %8 = vector.shape_cast %7 : vector<1x32x16xf32> to vector<32x16xf32>
    %cst_9 = arith.constant dense<0.000000e+00> : vector<16x16xf32>
    %9 = tpu.matmul %0, %8, %cst_9 {dimension_numbers = #tpu.dot_dimension_numbers<[1], [0], [0], [1], [0, 0, 1, 1], [], []>} : vector<16x32xf32>, vector<32x16xf32>, vector<16x16xf32> -> vector<16x16xf32>
    %10 = vector.shape_cast %3 : vector<16x16xf32> to vector<2x8x16xf32>
    %11 = vector.shape_cast %6 : vector<16x16xf32> to vector<2x8x16xf32>
    %12 = vector.shape_cast %9 : vector<16x16xf32> to vector<2x8x16xf32>
    %cst_10 = arith.constant dense<0.000000e+00> : vector<2x8x8xf32>
    %13 = tpu.matmul %10, %11, %cst_10 {dimension_numbers = #tpu.dot_dimension_numbers<[2], [2], [1], [1], [0, 0, 0, 1, 1, 1], [0], [0]>} : vector<2x8x16xf32>, vector<2x8x16xf32>, vector<2x8x8xf32> -> vector<2x8x8xf32>
    %14 = tpu.iota {dimensions = array<i32: 0>} : vector<8x8xi32>
    %15 = tpu.iota {dimensions = array<i32: 1>} : vector<8x8xi32>
    %16 = arith.cmpi sle, %15, %14 : vector<8x8xi32>
    %17 = vector.shape_cast %16 : vector<8x8xi1> to vector<1x8x8xi1>
    %cst_11 = arith.constant 0xFF800000 : f32
    %18 = vector.shape_cast %17 : vector<1x8x8xi1> to vector<1x8x8xi1>
    %19 = vector.broadcast %18 : vector<1x8x8xi1> to vector<2x8x8xi1>
    %20 = vector.broadcast %cst_11 : f32 to vector<2x8x8xf32>
    %21 = arith.select %19, %13, %20 : vector<2x8x8xi1>, vector<2x8x8xf32>
    %cst_12 = arith.constant dense<0xFF800000> : vector<2x8xf32>
    %22 = vector.multi_reduction <maximumf>, %21, %cst_12 [2] : vector<2x8x8xf32> to vector<2x8xf32>
    %23 = vector.shape_cast %22 : vector<2x8xf32> to vector<2x8x1xf32>
    %24 = vector.broadcast %23 : vector<2x8x1xf32> to vector<2x8x8xf32>
    %25 = arith.subf %21, %24 : vector<2x8x8xf32>
    %26 = math.exp %25 : vector<2x8x8xf32>
    %cst_13 = arith.constant dense<0.000000e+00> : vector<2x8xf32>
    %27 = vector.multi_reduction <add>, %26, %cst_13 [2] : vector<2x8x8xf32> to vector<2x8xf32>
    %28 = vector.shape_cast %27 : vector<2x8xf32> to vector<2x8x1xf32>
    %29 = tpu.reciprocal %28 {approx = true} : vector<2x8x1xf32> -> vector<2x8x1xf32>
    %30 = arith.mulf %28, %29 : vector<2x8x1xf32>
    %cst_14 = arith.constant 2.000000e+00 : f32
    %31 = vector.broadcast %cst_14 : f32 to vector<2x8x1xf32>
    %32 = arith.subf %31, %30 : vector<2x8x1xf32>
    %33 = arith.mulf %29, %32 : vector<2x8x1xf32>
    %34 = vector.broadcast %33 : vector<2x8x1xf32> to vector<2x8x8xf32>
    %35 = arith.mulf %26, %34 : vector<2x8x8xf32>
    %cst_15 = arith.constant dense<0.000000e+00> : vector<2x8x16xf32>
    %36 = tpu.matmul %35, %12, %cst_15 {dimension_numbers = #tpu.dot_dimension_numbers<[2], [1], [1], [2], [0, 0, 0, 1, 1, 2], [0], [0]>} : vector<2x8x8xf32>, vector<2x8x16xf32>, vector<2x8x16xf32> -> vector<2x8x16xf32>
    %37 = vector.shape_cast %36 : vector<2x8x16xf32> to vector<16x16xf32>
    %c0_16 = arith.constant 0 : index
    %c0_17 = arith.constant 0 : index
    %38 = vector.load %arg2[%c0_16, %c0_17] : memref<16x16xf32, #tpu.memory_space<vmem>>, vector<16x16xf32>
    tpu.vector_store %arg2[%c0_16, %c0_17], %37 {strides = array<i32>} : memref<16x16xf32, #tpu.memory_space<vmem>>, vector<16x16xf32>,
    return
  }
}

</mosaic_0001>

<bundles_post_ra>
// kernel: tpu_custom_call.1
= control target key start
LH: loop header
LB: loop body
LE: loop exit
PB: predicated region body
PF: predicated region fallthrough
CT: control target
= control target key end

     0   :  { %s836_s0 = inlined_call_operand.vmem [shape: f32[16,32], index: 0, kind: input, shape index: {}]   ;;  %s837_s1 = inlined_call_operand.vmem [shape: f32[3,32,16], index: 1, kind: input, shape index: {}]   ;;  %s838_s2 = inlined_call_operand.hbm [shape: f32[16,16], index: 2, kind: output, shape index: {}]  }
   0x1   :  { %v620_v0 = vld [vmem:[%s837_s1 + $0x38] sm:$0xff]  ;;  %v619_v2 = vld [vmem:[%s837_s1 + $0x30] sm:$0xff]  ;;  %v618_v4 = vld [vmem:[%s837_s1 + $0x28] sm:$0xff] }
   0x2   :  { %v17_v1 = vld [vmem:[%s837_s1 + $0x18] sm:$0xff]  ;;  %672 = vmatprep.subr.mxu1 %v620_v0  ;;  %v16_v3 = vld [vmem:[%s837_s1 + $0x10] sm:$0xff]  ;;  %v15_v5 = vld [vmem:[%s837_s1 + $0x8] sm:$0xff] }
   0x3   :  { %661 = vmatprep.subr.mxu0 %v17_v1  ;;  %673 = vmatpush3.msra.mxu1 %v620_v0 }
   0x4   :  { %662 = vmatpush3.msra.mxu0 %v17_v1  ;;  %674 = vmatprep.subr.mxu1 %v619_v2 }
   0x5   :  { %663 = vmatprep.subr.mxu0 %v16_v3 }
   0x6   :  { %7 = vsyncpa [#allocation3], 0  ;;  %675 = vmatpush3.msra.mxu1 %v619_v2  ;;  %664 = vmatpush3.msra.mxu0 %v16_v3  ;;  %v617_v6 = vld [vmem:[%s837_s1 + $0x20] sm:$0xff]  ;;  %vm18_vm0 = vcmask 261120   ;;  %v13_v9 = vld [vmem:[%s836_s0 + $0x8] sm:$0xff]  ;;  %v749_v10 = vmov 0.0   ;;  %v413_v19 = vlaneseq }
   0x7   :  { %v12_v7 = vld [vmem:[%s836_s0] sm:$0xff]  ;;  %676 = vmatprep.subr.mxu1 %v618_v4  ;;  %665 = vmatprep.subr.mxu0 %v15_v5  ;;  %vm750_vm1 = vmmov 0   ;;  %vm260_vm2 = vcmask 130048   ;;  %v626_v15 = vld [vmem:[%s837_s1 + $0x58] sm:$0xff]  ;;  %v625_v16 = vld [vmem:[%s837_s1 + $0x50] sm:$0xff]  ;;  %vm422_vm4 = vcmask 64512  }
   0x8   :  { %v14_v8 = vld [vmem:[%s837_s1] sm:$0xff]  ;;  %677 = vmatpush3.msra.mxu1 %v618_v4  ;;  %666 = vmatpush3.msra.mxu0 %v15_v5  ;;  %v624_v17 = vld [vmem:[%s837_s1 + $0x48] sm:$0xff]  ;;  %v414_v20 = vshrl.u32 %v413_v19, 7  ;;  %v416_v21 = vand.u32 127, %v413_v19 }
   0x9   :  { %678 = vmatprep.subr.mxu1 %v617_v6  ;;  %680 = vmatprep.mubr.msk.f32.mxu1 %vm18_vm0, %v12_v7  ;;  %v623_v18 = vld [vmem:[%s837_s1 + $0x40] sm:$0xff]  ;;  %s751_s1 = smov [#allocation2]  }
   0xa   :  { %679 = vmatpush3.msra.mxu1 %v617_v6  ;;  %667 = vmatprep.subr.mxu0 %v14_v8  ;;  %vm417_vm3 = vcmp.le.s32.totalorder %v416_v21, %v414_v20  ;;  %s604_s8 = sshll.u32 %s751_s1, 4  ;;  %s605_s8 = int_to_ptr.vmem [resolvable:$true] %s604_s8 }
   0xb   :  { %681 = vmatmul.mubr.msk.f32.vlgmr.msra.gmra.mxu1 %vm18_vm0, %v13_v9  ;;  %668 = vmatpush3.msra.mxu0 %v14_v8  ;;  %s727_s9 = scalar_lea.vmem %s605_s8, 256  ;;  %p732_p1 = scmp.lt.s32.totalorder %s605_s8, %s605_s8 }
   0xc   :  { %669 = vmatprep.mubr.msk.f32.mxu0 %vm18_vm0, %v12_v7  ;;  %694 = vmatprep.subr.mxu1 %v749_v10  ;;  %p728_p0 = scmp.ne.s32.totalorder %s605_s8, %s727_s9  ;;  %p733_p2 = scmp.lt.s32.totalorder %s727_s9, %s727_s9 }
   0xd   :  { %670 = vmatmul.mubr.msk.f32.vlgmr.msra.gmra.mxu0 %vm18_vm0, %v13_v9  ;;  %696 = vmatprep.mubr.msk.f32.mxu1 %vm750_vm1, %v749_v10 }
   0xe   :  { %691 = vmatprep.mubr.msk.f32.mxu0 %vm18_vm0, %v12_v7  ;;  %683 = vmatprep.subr.mxu0 %v626_v15  ;;  %p734_p3 = por %p733_p2, %p732_p1 }
   0xf   :  { %684 = vmatpush3.msra.mxu0 %v626_v15 }
  0x10   :  { %685 = vmatprep.subr.mxu0 %v625_v16  ;;  %p735_p4 = pnand %p734_p3, %p728_p0 }
  0x11   :  { %686 = vmatpush3.msra.mxu0 %v625_v16 }
  0x12   :  { %687 = vmatprep.subr.mxu0 %v624_v17 }
  0x13   :  { %688 = vmatpush3.msra.mxu0 %v624_v17 }
  0x14   :  { %689 = vmatprep.subr.mxu0 %v623_v18 }
  0x15   :  { %690 = vmatpush3.msra.mxu0 %v623_v18 }
  0x16   :  { %692 = vmatmul.mubr.msk.f32.vlgmr.msra.gmra.mxu0 %vm18_vm0, %v13_v9  ;;  %704 = vmatprep.subr.mxu0 %v749_v10 }
  0x17   :  { %706 = vmatprep.mubr.msk.f32.mxu0 %vm750_vm1, %v749_v10 }
  0xcb   :  { %v682_v11 = vpop.f32.mrf.mxu1 }
  0xcd   :  { %v671_v12 = vpop.f32.mrf.mxu0  ;;  %v171_v13 = vpop.f32.mrf.mxu1 }
  0xce   :  { %695 = vmatpush3.xpose.msk.msra.mxu1 %vm260_vm2, %v171_v13 }
  0xcf   :  { %699 = vmatprep.subr.mxu1 %v749_v10  ;;  %v91_v14 = vpop.f32.mrf.mxu0 }
  0xd1   :  { %697 = vmatmul.mubr.msk.f32.vlgmr.msra.gmra.mxu1 %vm260_vm2, %v91_v14 }
  0xd2   :  { %700 = vmatpush3.xpose.msk.msra.mxu1 %vm260_vm2, %v682_v11  ;;  %701 = vmatprep.mubr.msk.f32.mxu1 %vm750_vm1, %v749_v10 }
  0xd3   :  { %709 = vmatprep.subr.mxu1 %v749_v10 }
  0xd5   :  { %702 = vmatmul.mubr.msk.f32.vlgmr.msra.gmra.mxu1 %vm260_vm2, %v671_v12 }
  0xd6   :  { %711 = vmatprep.mubr.msk.f32.mxu1 %vm750_vm1, %v749_v10  ;;  %v693_v40 = vpop.f32.mrf.mxu0 }
  0xd7   :  { %710 = vmatpush3.msra.mxu1 %v693_v40 }
  0xd8   :  { %v251_v41 = vpop.f32.mrf.mxu0 }
  0xd9   :  { %705 = vmatpush3.msra.mxu0 %v251_v41 }
 0x191   :  { %v333_v22 = vpop.f32.mrf.mxu1 }
 0x192   :  { %v420_v23 = vsel %vm417_vm3, %v333_v22, -inf }
 0x193   :  { %v698_v24 = vpop.f32.mrf.mxu1  ;;  %v423_v25 = vsel %vm422_vm4, %v420_v23, -inf }
 0x194   :  { %424 = vmax.xlane.f32.xlu0 %v423_v25 }
 0x195   :  { %v409_v26 = vpop.f32.mrf.mxu1 }
 0x196   :  { %v421_v27 = vsel %vm417_vm3, %v409_v26, -inf }
 0x197   :  { %v703_v28 = vpop.f32.mrf.mxu1  ;;  %v426_v29 = vsel %vm422_vm4, %v421_v27, -inf }
 0x198   :  { %427 = vmax.xlane.f32.xlu0 %v426_v29 }
 0x21d   :  { %v425_v30 = vpop.xlane.xlu0 %424 }
 0x21e   :  { %v429_v31 = vsub.f32 %v420_v23, %v425_v30 }
 0x220   :  { %v431_v32 = vmul.f32 1.442695, %v429_v31 }
 0x221   :  { %v428_v33 = vpop.xlane.xlu0 %427 }
 0x222   :  { %719 = vpow2.f32 %v431_v32  ;;  %v430_v34 = vsub.f32 %v421_v27, %v428_v33 }
 0x224   :  { %v433_v35 = vmul.f32 1.442695, %v430_v34 }
 0x226   :  { %721 = vpow2.f32 %v433_v35 }
 0x22f   :  { %v720_v36 = vpop.eup %719 }
 0x230   :  { %v435_v37 = vsel %vm422_vm4, %v720_v36, 0.0 }
 0x231   :  { %436 = vadd.xlane.f32.xlu1 %v435_v37 }
 0x233   :  { %v722_v38 = vpop.eup %721 }
 0x234   :  { %v438_v39 = vsel %vm422_vm4, %v722_v38, 0.0 }
 0x235   :  { %439 = vadd.xlane.f32.xlu1 %v438_v39 }
 0x2ba   :  { %v437_v42 = vpop.xlane.xlu1 %436 }
 0x2bb   :  { %723 = vrcp.f32 %v437_v42 }
 0x2be   :  { %v440_v43 = vpop.xlane.xlu1 %439 }
 0x2bf   :  { %725 = vrcp.f32 %v440_v43 }
 0x2c8   :  { %v724_v44 = vpop.eup %723 }
 0x2c9   :  { %v443_v45 = vmul.f32 %v724_v44, %v437_v42 }
 0x2cb   :  { %v445_v46 = vsub.f32 2.0, %v443_v45 }
 0x2cc   :  { %v726_v47 = vpop.eup %725 }
 0x2cd   :  { %v447_v48 = vmul.f32 %v724_v44, %v445_v46  ;;  %v444_v49 = vmul.f32 %v726_v47, %v440_v43 }
 0x2cf   :  { %v449_v50 = vmul.f32 %v720_v36, %v447_v48  ;;  %v446_v51 = vsub.f32 2.0, %v444_v49 }
 0x2d1   :  { %v448_v52 = vmul.f32 %v726_v47, %v446_v51  ;;  %707 = vmatmul.mubr.msk.f32.vlgmr.msra.gmra.mxu0 %vm422_vm4, %v449_v50 }
 0x2d3   :  { %v450_v53 = vmul.f32 %v722_v38, %v448_v52 }
 0x2d5   :  { %712 = vmatmul.mubr.msk.f32.vlgmr.msra.gmra.mxu1 %vm422_vm4, %v450_v53 }
 0x391   :  { %v520_v54 = vpop.f32.mrf.mxu0 }
 0x392   :  { %597 = vst.msk [vmem:[#allocation2] sm:$0xff] %vm260_vm2, %v520_v54 }
 0x393   :  { %v708_v55 = vpop.f32.mrf.mxu0 }
 0x395   :  { %v593_v56 = vpop.f32.mrf.mxu1 }
 0x396   :  { %598 = vst.msk [vmem:[#allocation2 + $0x8] sm:$0xff] %vm260_vm2, %v593_v56 }
 0x397   :  { %v713_v57 = vpop.f32.mrf.mxu1 }
 0x398   :  { %738 = shalt.err (!%p735_p4)
}
 0x399   :  { %s752_s10 = smov 128   ;;  %s753_s11 = smov 8  }
 0x39a   :  { %610 = dma.vmem_to_hbm [thread:$0]  %s605_s8, 256, %s838_s2, [#allocation3], %s752_s10, %s752_s10, %s753_s11  }
 0x39b   :  { %747 = dma.done.wait [#allocation3], 256  }
 0x39c   :  { %748 = vsyncadd [#allocation3], 4294967040 }
 0x39d   :  { %614 = vsyncpa [#allocation3], 1 }

</bundles_post_ra>
